<compile_context>
chip_gen: v7x
topology: tpu7x:2x2x1
jax: 0.10.0
libtpu: 0.0.40
codegen_flags: <defaults>
</compile_context>

<pallas_src>
import functools

import jax
import jax.numpy as jnp
from jax.experimental import pallas as pl
from jax.experimental.pallas import tpu as pltpu


_NEG_BIG = -1e30  # large-negative sentinel (avoids -inf - -inf = NaN)


def _noisy_ce_kernel(logits_ref, targets_ref, out_ref,
                     m_ref, s_ref, tl_ref, oh_ref,
                     *, p, n_rows, n_cols, tile_n, tile_c):
    i = pl.program_id(0)            # row-tile index over N     ("parallel")
    j = pl.program_id(1)            # class-tile index over C   ("arbitrary")
    n_c_tiles = pl.num_programs(1)

    # ---- reset per-row online-softmax state at the start of each row tile ----
    @pl.when(j == 0)
    def _init():
        m_ref[...] = jnp.full_like(m_ref, _NEG_BIG)
        s_ref[...] = jnp.zeros_like(s_ref)
        tl_ref[...] = jnp.zeros_like(tl_ref)
        oh_ref[...] = jnp.zeros_like(oh_ref)
        out_ref[...] = jnp.zeros_like(out_ref)

    # Keep all math in f32 (bf16 logits are upcast here; v5e has no bf16 VPU/EUP).
    logits = logits_ref[...].astype(jnp.float32)            # [tile_n, tile_c]
    tgt = targets_ref[...]                                    # [tile_n, 1] int32

    # Global class ids of this C tile; mask lanes past the true vocab size.
    col = jax.lax.broadcasted_iota(jnp.int32, (tile_n, tile_c), 1) + j * tile_c
    col_valid = col < n_cols
    target_mask = jnp.logical_and(col == tgt, col_valid)      # bool [tile_n, tile_c]

    masked_logits = jnp.where(col_valid, logits, _NEG_BIG)

    # ---- online softmax statistics (single HBM pass over logits) ----
    m_prev = m_ref[...]
    m_new = jnp.maximum(m_prev, jnp.max(masked_logits, axis=1, keepdims=True))
    s_ref[...] = (s_ref[...] * jnp.exp(m_prev - m_new)
                  + jnp.sum(jnp.exp(masked_logits - m_new), axis=1, keepdims=True))
    m_ref[...] = m_new

    # Target logit and the literal one_hot(...).sum(dim=1) term via select
    # (no full-tile f32 one-hot temporary).
    tl_ref[...] += jnp.sum(jnp.where(target_mask, logits, 0.0),
                           axis=1, keepdims=True)
    oh_ref[...] += jnp.sum(target_mask.astype(jnp.float32),
                           axis=1, keepdims=True)

    # ---- finalize this row tile on the last C tile ----
    @pl.when(j == n_c_tiles - 1)
    def _finalize():
        lse = jnp.log(s_ref[...]) + m_ref[...]                 # [tile_n, 1]
        losses = lse - tl_ref[...]
        weights = (1.0 - p) + p * (1.0 - oh_ref[...])
        row = jax.lax.broadcasted_iota(jnp.int32, (tile_n, 1), 0) + i * tile_n
        contrib = jnp.where(row < n_rows, losses * weights, 0.0)  # mask padded rows
        partial = jnp.sum(contrib)
        # Lane-dense partial-sum output block (unmasked stores); reduced in wrapper.
        out_ref[...] = jnp.full(out_ref.shape, partial, dtype=jnp.float32)


def _round_up(x, m):
    return (x + m - 1) // m * m


def noisy_cross_entropy_loss(logits, targets, p_noisy, *, tile_n=None, tile_c=None):
    """logits: [N, C] float32 (or bfloat16), targets: [N] int class indices."""
    N, C = logits.shape
    itemsize = jnp.dtype(logits.dtype).itemsize
    targets_2d = targets.astype(jnp.int32).reshape(N, 1)

    # ---- tile selection ----
    # Lane dim must be the full C or a multiple of 128.
    if tile_c is None:
        tile_c = C if C <= 2048 else 2048
    # Row-tile budget ~4 MiB per logits buffer: fits double-buffered well
    # under the v7x 64 MiB VMEM while still amortizing grid-step overhead
    # on v5e/v6e.
    if tile_n is None:
        budget = 4 * 1024 * 1024
        tile_n = max(8, (budget // (tile_c * itemsize)) // 8 * 8)
        tile_n = min(tile_n, 1024, _round_up(N, 8))

    num_n_tiles = pl.cdiv(N, tile_n)
    num_c_tiles = pl.cdiv(C, tile_c)

    est_vmem = (2 * tile_n * tile_c * itemsize      # double-buffered logits tiles
                + 2 * tile_n * 4                    # targets tiles
                + 2 * 8 * 128 * 4                   # output block
                + 4 * tile_n * 4)                   # scratch accumulators
    vmem_limit = int(min(max(32 * 2**20, 3 * est_vmem), 48 * 2**20))

    kernel = functools.partial(_noisy_ce_kernel, p=float(p_noisy),
                               n_rows=N, n_cols=C,
                               tile_n=tile_n, tile_c=tile_c)

    partials = pl.pallas_call(
        kernel,
        out_shape=jax.ShapeDtypeStruct((num_n_tiles, 8, 128), jnp.float32),
        grid_spec=pltpu.PrefetchScalarGridSpec(
            num_scalar_prefetch=0,
            grid=(num_n_tiles, num_c_tiles),
            in_specs=[
                pl.BlockSpec((tile_n, tile_c), lambda i, j: (i, j)),   # logits
                pl.BlockSpec((tile_n, 1), lambda i, j: (i, 0)),        # targets
            ],
            out_specs=pl.BlockSpec((1, 8, 128), lambda i, j: (i, 0, 0)),
            scratch_shapes=[pltpu.VMEM((tile_n, 1), jnp.float32)] * 4,
        ),
        compiler_params=pltpu.CompilerParams(
            dimension_semantics=("parallel", "arbitrary"),
            vmem_limit_bytes=vmem_limit,
        ),
        cost_estimate=pl.CostEstimate(
            flops=6 * N * C,
            transcendentals=N * C,
            bytes_accessed=N * C * itemsize + N * 4 + num_n_tiles * 8 * 128 * 4,
        ),
    )(logits, targets_2d)

    # Tiny final reduction over per-tile partials done in plain XLA.
    return jnp.sum(partials[:, 0, 0]) / jnp.float32(N)


def _reference(logits, targets, p):
    # Pure-JAX reference mirroring the PyTorch forward.
    logp = jax.nn.log_softmax(logits.astype(jnp.float32), axis=1)
    losses = -jnp.take_along_axis(logp, targets[:, None], axis=1)[:, 0]
    one_hot = jax.nn.one_hot(targets, logits.shape[1], dtype=jnp.float32)
    weights = 1.0 - p + p * (1.0 - one_hot.sum(axis=1))
    return jnp.mean(losses * weights)


if __name__ == "__main__":
    key = jax.random.PRNGKey(0)
    p_noisy = 0.2  # deterministic module "parameter"

    # Case 1: small synthetic shapes (batch=8, num_classes=32), single tile.
    k1, k2, k3, k4 = jax.random.split(key, 4)
    N1, C1 = 8, 32
    logits1 = jax.random.normal(k1, (N1, C1), dtype=jnp.float32)
    targets1 = jax.random.randint(k2, (N1,), 0, C1, dtype=jnp.int32)
    out1 = jax.block_until_ready(noisy_cross_entropy_loss(logits1, targets1, p_noisy))
    ref1 = _reference(logits1, targets1, p_noisy)
    assert jnp.allclose(out1, ref1, rtol=1e-5, atol=1e-5), (out1, ref1)

    # Case 2: exercises the tiled / masked paths (N % TILE_N != 0, C tiled with a
    # padded last lane tile, multi-step online softmax).
    N2, C2 = 20, 160
    logits2 = jax.random.normal(k3, (N2, C2), dtype=jnp.float32)
    targets2 = jax.random.randint(k4, (N2,), 0, C2, dtype=jnp.int32)
    out2 = jax.block_until_ready(
        noisy_cross_entropy_loss(logits2, targets2, p_noisy, tile_n=8, tile_c=128))
    ref2 = _reference(logits2, targets2, p_noisy)
    assert jnp.allclose(out2, ref2, rtol=1e-5, atol=1e-5), (out2, ref2)

    print("KERNEL_OK")
</pallas_src>

<mosaic_0001>
module attributes {stable_mosaic.version = 11 : i64} {
  func.func @_noisy_ce_kernel(%arg0: i32, %arg1: i32, %arg2: memref<8x32xf32, #tpu.memory_space<vmem>>, %arg3: memref<8x1xi32, #tpu.memory_space<vmem>>, %arg4: memref<1x8x128xf32, #tpu.memory_space<vmem>>, %arg5: memref<8x1xf32, #tpu.memory_space<vmem>>, %arg6: memref<8x1xf32, #tpu.memory_space<vmem>>, %arg7: memref<8x1xf32, #tpu.memory_space<vmem>>, %arg8: memref<8x1xf32, #tpu.memory_space<vmem>>) attributes {dimension_semantics = [#tpu.dimension_semantics<parallel>, #tpu.dimension_semantics<arbitrary>], iteration_bounds = array<i64: 1, 1>, scalar_prefetch = 0 : i64, scratch_operands = 4 : i64, tpu.core_type = #tpu.core_type<tc>, window_params = [{transform_indices = @transform_0, window_bounds = array<i64: 8, 32>}, {transform_indices = @transform_1, window_bounds = array<i64: 8, 1>}, {transform_indices = @transform_2, window_bounds = array<i64: 1, 8, 128>}]} {
    %c0_i32 = arith.constant 0 : i32
    %0 = arith.cmpi eq, %arg1, %c0_i32 : i32
    %1 = arith.extui %0 : i1 to i32
    %c0_i32_0 = arith.constant 0 : i32
    %2 = arith.cmpi ne, %1, %c0_i32_0 : i32
    scf.if %2 {
      %cst_28 = arith.constant -1.000000e+30 : f32
      %49 = vector.broadcast %cst_28 : f32 to vector<8x1xf32>
      %c0_29 = arith.constant 0 : index
      %c0_30 = arith.constant 0 : index
      %50 = vector.load %arg5[%c0_29, %c0_30] : memref<8x1xf32, #tpu.memory_space<vmem>>, vector<8x1xf32>
      tpu.vector_store %arg5[%c0_29, %c0_30], %49 {strides = array<i32>} : memref<8x1xf32, #tpu.memory_space<vmem>>, vector<8x1xf32>,
      %cst_31 = arith.constant 0.000000e+00 : f32
      %51 = vector.broadcast %cst_31 : f32 to vector<8x1xf32>
      %c0_32 = arith.constant 0 : index
      %c0_33 = arith.constant 0 : index
      %52 = vector.load %arg6[%c0_32, %c0_33] : memref<8x1xf32, #tpu.memory_space<vmem>>, vector<8x1xf32>
      tpu.vector_store %arg6[%c0_32, %c0_33], %51 {strides = array<i32>} : memref<8x1xf32, #tpu.memory_space<vmem>>, vector<8x1xf32>,
      %cst_34 = arith.constant 0.000000e+00 : f32
      %53 = vector.broadcast %cst_34 : f32 to vector<8x1xf32>
      %c0_35 = arith.constant 0 : index
      %c0_36 = arith.constant 0 : index
      %54 = vector.load %arg7[%c0_35, %c0_36] : memref<8x1xf32, #tpu.memory_space<vmem>>, vector<8x1xf32>
      tpu.vector_store %arg7[%c0_35, %c0_36], %53 {strides = array<i32>} : memref<8x1xf32, #tpu.memory_space<vmem>>, vector<8x1xf32>,
      %cst_37 = arith.constant 0.000000e+00 : f32
      %55 = vector.broadcast %cst_37 : f32 to vector<8x1xf32>
      %c0_38 = arith.constant 0 : index
      %c0_39 = arith.constant 0 : index
      %56 = vector.load %arg8[%c0_38, %c0_39] : memref<8x1xf32, #tpu.memory_space<vmem>>, vector<8x1xf32>
      tpu.vector_store %arg8[%c0_38, %c0_39], %55 {strides = array<i32>} : memref<8x1xf32, #tpu.memory_space<vmem>>, vector<8x1xf32>,
      %cst_40 = arith.constant 0.000000e+00 : f32
      %57 = vector.broadcast %cst_40 : f32 to vector<1x8x128xf32>
      %c0_41 = arith.constant 0 : index
      %c0_42 = arith.constant 0 : index
      %c0_43 = arith.constant 0 : index
      %58 = vector.load %arg4[%c0_41, %c0_42, %c0_43] : memref<1x8x128xf32, #tpu.memory_space<vmem>>, vector<1x8x128xf32>
      tpu.vector_store %arg4[%c0_41, %c0_42, %c0_43], %57 {strides = array<i32>} : memref<1x8x128xf32, #tpu.memory_space<vmem>>, vector<1x8x128xf32>,
    } else {
    }
    %c0 = arith.constant 0 : index
    %c0_1 = arith.constant 0 : index
    %3 = vector.load %arg2[%c0, %c0_1] : memref<8x32xf32, #tpu.memory_space<vmem>>, vector<8x32xf32>
    %c0_2 = arith.constant 0 : index
    %c0_3 = arith.constant 0 : index
    %4 = vector.load %arg3[%c0_2, %c0_3] : memref<8x1xi32, #tpu.memory_space<vmem>>, vector<8x1xi32>
    %5 = tpu.iota {dimensions = array<i32: 1>} : vector<8x32xi32>
    %c32_i32 = arith.constant 32 : i32
    %6 = arith.muli %arg1, %c32_i32 : i32
    %7 = vector.broadcast %6 : i32 to vector<8x32xi32>
    %8 = arith.addi %5, %7 : vector<8x32xi32>
    %c32_i32_4 = arith.constant 32 : i32
    %9 = vector.broadcast %c32_i32_4 : i32 to vector<8x32xi32>
    %10 = arith.cmpi slt, %8, %9 : vector<8x32xi32>
    %11 = vector.broadcast %4 : vector<8x1xi32> to vector<8x32xi32>
    %12 = arith.cmpi eq, %8, %11 : vector<8x32xi32>
    %13 = arith.andi %12, %10 : vector<8x32xi1>
    %cst = arith.constant -1.000000e+30 : f32
    %14 = vector.broadcast %cst : f32 to vector<8x32xf32>
    %15 = arith.select %10, %3, %14 : vector<8x32xi1>, vector<8x32xf32>
    %c0_5 = arith.constant 0 : index
    %c0_6 = arith.constant 0 : index
    %16 = vector.load %arg5[%c0_5, %c0_6] : memref<8x1xf32, #tpu.memory_space<vmem>>, vector<8x1xf32>
    %cst_7 = arith.constant dense<0xFF800000> : vector<8xf32>
    %17 = vector.multi_reduction <maximumf>, %15, %cst_7 [1] : vector<8x32xf32> to vector<8xf32>
    %18 = vector.shape_cast %17 : vector<8xf32> to vector<8x1xf32>
    %19 = arith.maximumf %16, %18 : vector<8x1xf32>
    %c0_8 = arith.constant 0 : index
    %c0_9 = arith.constant 0 : index
    %20 = vector.load %arg6[%c0_8, %c0_9] : memref<8x1xf32, #tpu.memory_space<vmem>>, vector<8x1xf32>
    %21 = arith.subf %16, %19 : vector<8x1xf32>
    %22 = math.exp %21 : vector<8x1xf32>
    %23 = arith.mulf %20, %22 : vector<8x1xf32>
    %24 = vector.broadcast %19 : vector<8x1xf32> to vector<8x32xf32>
    %25 = arith.subf %15, %24 : vector<8x32xf32>
    %26 = math.exp %25 : vector<8x32xf32>
    %cst_10 = arith.constant dense<0.000000e+00> : vector<8xf32>
    %27 = vector.multi_reduction <add>, %26, %cst_10 [1] : vector<8x32xf32> to vector<8xf32>
    %28 = vector.shape_cast %27 : vector<8xf32> to vector<8x1xf32>
    %29 = arith.addf %23, %28 : vector<8x1xf32>
    %c0_11 = arith.constant 0 : index
    %c0_12 = arith.constant 0 : index
    %30 = vector.load %arg6[%c0_11, %c0_12] : memref<8x1xf32, #tpu.memory_space<vmem>>, vector<8x1xf32>
    tpu.vector_store %arg6[%c0_11, %c0_12], %29 {strides = array<i32>} : memref<8x1xf32, #tpu.memory_space<vmem>>, vector<8x1xf32>,
    %c0_13 = arith.constant 0 : index
    %c0_14 = arith.constant 0 : index
    %31 = vector.load %arg5[%c0_13, %c0_14] : memref<8x1xf32, #tpu.memory_space<vmem>>, vector<8x1xf32>
    tpu.vector_store %arg5[%c0_13, %c0_14], %19 {strides = array<i32>} : memref<8x1xf32, #tpu.memory_space<vmem>>, vector<8x1xf32>,
    %c0_15 = arith.constant 0 : index
    %c0_16 = arith.constant 0 : index
    %32 = vector.load %arg7[%c0_15, %c0_16] : memref<8x1xf32, #tpu.memory_space<vmem>>, vector<8x1xf32>
    %cst_17 = arith.constant 0.000000e+00 : f32
    %33 = vector.broadcast %cst_17 : f32 to vector<8x32xf32>
    %34 = arith.select %13, %3, %33 : vector<8x32xi1>, vector<8x32xf32>
    %cst_18 = arith.constant dense<0.000000e+00> : vector<8xf32>
    %35 = vector.multi_reduction <add>, %34, %cst_18 [1] : vector<8x32xf32> to vector<8xf32>
    %36 = vector.shape_cast %35 : vector<8xf32> to vector<8x1xf32>
    %37 = arith.addf %32, %36 : vector<8x1xf32>
    %c0_19 = arith.constant 0 : index
    %c0_20 = arith.constant 0 : index
    %38 = vector.load %arg7[%c0_19, %c0_20] : memref<8x1xf32, #tpu.memory_space<vmem>>, vector<8x1xf32>
    tpu.vector_store %arg7[%c0_19, %c0_20], %37 {strides = array<i32>} : memref<8x1xf32, #tpu.memory_space<vmem>>, vector<8x1xf32>,
    %c0_21 = arith.constant 0 : index
    %c0_22 = arith.constant 0 : index
    %39 = vector.load %arg8[%c0_21, %c0_22] : memref<8x1xf32, #tpu.memory_space<vmem>>, vector<8x1xf32>
    %40 = arith.extui %13 : vector<8x32xi1> to vector<8x32xi32>
    %41 = arith.sitofp %40 : vector<8x32xi32> to vector<8x32xf32>
    %cst_23 = arith.constant dense<0.000000e+00> : vector<8xf32>
    %42 = vector.multi_reduction <add>, %41, %cst_23 [1] : vector<8x32xf32> to vector<8xf32>
    %43 = vector.shape_cast %42 : vector<8xf32> to vector<8x1xf32>
    %44 = arith.addf %39, %43 : vector<8x1xf32>
    %c0_24 = arith.constant 0 : index
    %c0_25 = arith.constant 0 : index
    %45 = vector.load %arg8[%c0_24, %c0_25] : memref<8x1xf32, #tpu.memory_space<vmem>>, vector<8x1xf32>
    tpu.vector_store %arg8[%c0_24, %c0_25], %44 {strides = array<i32>} : memref<8x1xf32, #tpu.memory_space<vmem>>, vector<8x1xf32>,
    %c0_i32_26 = arith.constant 0 : i32
    %46 = arith.cmpi eq, %arg1, %c0_i32_26 : i32
    %47 = arith.extui %46 : i1 to i32
    %c0_i32_27 = arith.constant 0 : i32
    %48 = arith.cmpi ne, %47, %c0_i32_27 : i32
    scf.if %48 {
      %c0_28 = arith.constant 0 : index
      %c0_29 = arith.constant 0 : index
      %49 = vector.load %arg6[%c0_28, %c0_29] : memref<8x1xf32, #tpu.memory_space<vmem>>, vector<8x1xf32>
      %50 = math.log %49 : vector<8x1xf32>
      %c0_30 = arith.constant 0 : index
      %c0_31 = arith.constant 0 : index
      %51 = vector.load %arg5[%c0_30, %c0_31] : memref<8x1xf32, #tpu.memory_space<vmem>>, vector<8x1xf32>
      %52 = arith.addf %50, %51 : vector<8x1xf32>
      %c0_32 = arith.constant 0 : index
      %c0_33 = arith.constant 0 : index
      %53 = vector.load %arg7[%c0_32, %c0_33] : memref<8x1xf32, #tpu.memory_space<vmem>>, vector<8x1xf32>
      %54 = arith.subf %52, %53 : vector<8x1xf32>
      %c0_34 = arith.constant 0 : index
      %c0_35 = arith.constant 0 : index
      %55 = vector.load %arg8[%c0_34, %c0_35] : memref<8x1xf32, #tpu.memory_space<vmem>>, vector<8x1xf32>
      %cst_36 = arith.constant 1.000000e+00 : f32
      %56 = vector.broadcast %cst_36 : f32 to vector<8x1xf32>
      %57 = arith.subf %56, %55 : vector<8x1xf32>
      %cst_37 = arith.constant 2.000000e-01 : f32
      %58 = vector.broadcast %cst_37 : f32 to vector<8x1xf32>
      %59 = arith.mulf %58, %57 : vector<8x1xf32>
      %cst_38 = arith.constant 8.000000e-01 : f32
      %60 = vector.broadcast %cst_38 : f32 to vector<8x1xf32>
      %61 = arith.addf %60, %59 : vector<8x1xf32>
      %62 = tpu.iota {dimensions = array<i32: 0>} : vector<8x1xi32>
      %c8_i32 = arith.constant 8 : i32
      %63 = arith.muli %arg0, %c8_i32 : i32
      %64 = vector.broadcast %63 : i32 to vector<8x1xi32>
      %65 = arith.addi %62, %64 : vector<8x1xi32>
      %c8_i32_39 = arith.constant 8 : i32
      %66 = vector.broadcast %c8_i32_39 : i32 to vector<8x1xi32>
      %67 = arith.cmpi slt, %65, %66 : vector<8x1xi32>
      %68 = arith.mulf %54, %61 : vector<8x1xf32>
      %cst_40 = arith.constant 0.000000e+00 : f32
      %69 = vector.broadcast %cst_40 : f32 to vector<8x1xf32>
      %70 = arith.select %67, %68, %69 : vector<8x1xi1>, vector<8x1xf32>
      %71 = vector.shape_cast %70 : vector<8x1xf32> to vector<1x8x1xf32>
      %cst_41 = arith.constant dense<0.000000e+00> : vector<1xf32>
      %72 = vector.multi_reduction <add>, %71, %cst_41 [1, 2] : vector<1x8x1xf32> to vector<1xf32>
      %73 = vector.shape_cast %72 : vector<1xf32> to vector<1x1x1xf32>
      %74 = vector.extract %73[0, 0, 0] : f32 from vector<1x1x1xf32>
      %75 = vector.broadcast %74 : f32 to vector<1x8x128xf32>
      %c0_42 = arith.constant 0 : index
      %c0_43 = arith.constant 0 : index
      %c0_44 = arith.constant 0 : index
      %76 = vector.load %arg4[%c0_42, %c0_43, %c0_44] : memref<1x8x128xf32, #tpu.memory_space<vmem>>, vector<1x8x128xf32>
      tpu.vector_store %arg4[%c0_42, %c0_43, %c0_44], %75 {strides = array<i32>} : memref<1x8x128xf32, #tpu.memory_space<vmem>>, vector<1x8x128xf32>,
    } else {
    }
    return
  }
  func.func @transform_0(%arg0: i32, %arg1: i32) -> (i32, i32) {
    %c0_i32 = arith.constant 0 : i32
    return %arg0, %arg1 : i32, i32
  }
  func.func @transform_1(%arg0: i32, %arg1: i32) -> (i32, i32) {
    %c0_i32 = arith.constant 0 : i32
    %c0_i32_0 = arith.constant 0 : i32
    return %arg0, %c0_i32 : i32, i32
  }
  func.func @transform_2(%arg0: i32, %arg1: i32) -> (i32, i32, i32) {
    %c0_i32 = arith.constant 0 : i32
    %c0_i32_0 = arith.constant 0 : i32
    %c0_i32_1 = arith.constant 0 : i32
    return %arg0, %c0_i32, %c0_i32_0 : i32, i32, i32
  }
}

</mosaic_0001>

<bundles_post_ra>
// kernel: tpu_custom_call.1
= control target key start
LH: loop header
LB: loop body
LE: loop exit
PB: predicated region body
PF: predicated region fallthrough
CT: control target
= control target key end

     0   :  { %v24_v0 = vlaneseq  ;;  %s216_s0 = inlined_call_operand.vmem [shape: f32[8,32], index: 0, kind: input, shape index: {}]   ;;  %s217_s1 = inlined_call_operand.vmem [shape: s32[8,1], index: 1, kind: input, shape index: {}]   ;;  %s218_s2 = inlined_call_operand.hbm [shape: f32[1,8,128], index: 2, kind: output, shape index: {}]  }
   0x1   :  { %7 = vsyncpa [#allocation7], 0  ;;  %v22_v1 = vld [vmem:[%s216_s0] sm:$0xff]  ;;  %vm37_vm0 = vcmask 261120   ;;  %vm16_vm2 = vcmask 7168   ;;  %v165_v6 = vmov 0  }
   0x2   :  { %v25_v2 = vand.u32 127, %v24_v0  ;;  %v164_v5 = vmov -1e+30   ;;  %132 = vset.pattern.permute.xlu0 %v165_v6  ;;  %133 = vset.pattern.permute.xlu1 %v165_v6  ;;  %v23_v7 = vld [vmem:[%s217_s1] sm:$0xff]  ;;  %v166_v8 = vmov 0.0   ;;  %s167_s0 = smov [#allocation6]  }
   0x3   :  { %17 = vst.msk [vmem:[#allocation2] sm:$0xff] %vm16_vm2, %v164_v5  ;;  %31 = vperm.xlu1 %133, %v23_v7   ;;  %18 = vst.msk [vmem:[#allocation3] sm:$0xff] %vm16_vm2, %v166_v8  ;;  %s117_s1 = sshll.u32 %s167_s0, 4  ;;  %s118_s1 = int_to_ptr.vmem [resolvable:$true] %s117_s1 }
   0x4   :  { %vm29_vm1 = vcmp.lt.s32.totalorder %v25_v2, 32  ;;  %19 = vst.msk [vmem:[#allocation4] sm:$0xff] %vm16_vm2, %v166_v8  ;;  %20 = vst.msk [vmem:[#allocation5] sm:$0xff] %vm16_vm2, %v166_v8  ;;  %s140_s14 = scalar_lea.vmem %s118_s1, 128  ;;  %p145_p1 = scmp.lt.s32.totalorder %s118_s1, %s118_s1 }
   0x5   :  { %v35_v3 = vsel %vm29_vm1, %v22_v1, -1e+30  ;;  %p141_p0 = scmp.ne.s32.totalorder %s118_s1, %s140_s14  ;;  %p146_p2 = scmp.lt.s32.totalorder %s140_s14, %s140_s14 }
   0x6   :  { %v38_v4 = vsel %vm37_vm0, %v35_v3, -inf }
   0x7   :  { %39 = vmax.xlane.f32.xlu0 %v38_v4  ;;  %p147_p3 = por %p146_p2, %p145_p1 }
   0x9   :  { %p148_p4 = pnand %p147_p3, %p141_p0 }
   0xa   :  { %v36_v9 = vld [vmem:[#allocation2] sm:$0xff]  ;;  %v42_v25 = vld [vmem:[#allocation3] sm:$0xff] }
   0xb   :  { %v69_v29 = vld [vmem:[#allocation5] sm:$0xff]  ;;  %v62_v32 = vld [vmem:[#allocation4] sm:$0xff] }
  0x82   :  { %v32_v16 = vpop.permute.xlu1 %31 }
  0x83   :  { %vm33_vm3 = vcmp.eq.s32.totalorder %v25_v2, %v32_v16 }
  0x84   :  { %vm34_vm4 = vmand %vm33_vm3, %vm29_vm1 }
  0x85   :  { %v125_v18 = vsel %vm34_vm4, 1.0, %v166_v8  ;;  %v63_v21 = vsel %vm34_vm4, %v22_v1, 0.0 }
  0x86   :  { %v72_v20 = vsel %vm37_vm0, %v125_v18, 0.0  ;;  %v64_v22 = vsel %vm37_vm0, %v63_v21, 0.0 }
  0x94   :  { %v40_v10 = vpop.xlane.xlu0 %39 }
  0x95   :  { %v41_v11 = vmax.f32 %v36_v9, %v40_v10 }
  0x97   :  { %v43_v12 = vsub.f32 %v36_v9, %v41_v11  ;;  %61 = vst.msk [vmem:[#allocation2] sm:$0xff] %vm16_vm2, %v41_v11  ;;  %49 = vperm.xlu0 %132, %v41_v11  }
  0x99   :  { %v44_v23 = vmul.f32 1.442695, %v43_v12 }
  0x9e   :  { %v83_v41 = vld [vmem:[#allocation2] sm:$0xff] }
 0x116   :  { %v50_v13 = vpop.permute.xlu0 %49 }
 0x117   :  { %v52_v14 = vsub.f32 %v35_v3, %v50_v13 }
 0x119   :  { %v53_v15 = vmul.f32 1.442695, %v52_v14 }
 0x11b   :  { %134 = vpow2.f32 %v53_v15 }
 0x11c   :  { %136 = vpow2.f32 %v44_v23 }
 0x125   :  { %v135_v17 = vpop.eup %134 }
 0x126   :  { %v55_v19 = vsel %vm37_vm0, %v135_v17, 0.0  ;;  %v137_v24 = vpop.eup %136 }
 0x127   :  { %56 = vadd.xlane.f32.xlu1 %v55_v19  ;;  %v46_v26 = vmul.f32 %v137_v24, %v42_v25 }
 0x12b   :  { %73 = vadd.xlane.f32.xlu1 %v72_v20 }
 0x12f   :  { %65 = vadd.xlane.f32.xlu1 %v64_v22 }
 0x1b4   :  { %v57_v27 = vpop.xlane.xlu1 %56 }
 0x1b5   :  { %v58_v28 = vadd.f32 %v57_v27, %v46_v26 }
 0x1b7   :  { %60 = vst.msk [vmem:[#allocation3] sm:$0xff] %vm16_vm2, %v58_v28 }
 0x1b8   :  { %v74_v30 = vpop.xlane.xlu1 %73 }
 0x1b9   :  { %v75_v31 = vadd.f32 %v74_v30, %v69_v29 }
 0x1bb   :  { %76 = vst.msk [vmem:[#allocation5] sm:$0xff] %vm16_vm2, %v75_v31 }
 0x1bc   :  { %v66_v33 = vpop.xlane.xlu1 %65 }
 0x1bd   :  { %v67_v34 = vadd.f32 %v66_v33, %v62_v32 }
 0x1be   :  { %v80_v35 = vld [vmem:[#allocation3] sm:$0xff] }
 0x1bf   :  { %68 = vst.msk [vmem:[#allocation4] sm:$0xff] %vm16_vm2, %v67_v34  ;;  %138 = vlog2.f32 %v80_v35 }
 0x1c2   :  { %v87_v36 = vld [vmem:[#allocation5] sm:$0xff] }
 0x1c3   :  { %v88_v37 = vsub.f32 1.0, %v87_v36 }
 0x1c5   :  { %v89_v38 = vmul.f32 0.2, %v88_v37 }
 0x1c6   :  { %v85_v44 = vld [vmem:[#allocation4] sm:$0xff] }
 0x1c7   :  { %v90_v43 = vadd.f32 0.8, %v89_v38 }
 0x1c9   :  { %v139_v39 = vpop.eup %138 }
 0x1ca   :  { %v82_v40 = vmul.f32 0.6931472, %v139_v39 }
 0x1cc   :  { %v84_v42 = vadd.f32 %v83_v41, %v82_v40 }
 0x1ce   :  { %v86_v45 = vsub.f32 %v84_v42, %v85_v44 }
 0x1d0   :  { %v97_v46 = vmul.f32 %v90_v43, %v86_v45 }
 0x1d2   :  { %v99_v47 = vsel %vm16_vm2, %v97_v46, 0.0 }
 0x1d3   :  { %100 = vadd.xlane.f32.xlu0 %v99_v47 }
 0x260   :  { %v101_v48 = vpop.xlane.xlu0 %100 }
 0x261   :  { %v102_v49 = vrot.slane %v101_v48, 4 }
 0x263   :  { %v103_v50 = vadd.f32 %v102_v49, %v101_v48 }
 0x265   :  { %v104_v51 = vrot.slane %v103_v50, 2 }
 0x267   :  { %v105_v52 = vadd.f32 %v104_v51, %v103_v50 }
 0x269   :  { %v106_v53 = vrot.slane %v105_v52, 1 }
 0x26b   :  { %v107_v54 = vadd.f32 %v106_v53, %v105_v52 }
 0x26d   :  { %126 = vpush %v107_v54 }
 0x29e   :  { %s127_s13 = spop %126 }
 0x29f   :  { %v109_v55 = vstv %s127_s13 }
 0x2a0   :  { %110 = vst [vmem:[#allocation6] sm:$0xff] %v109_v55 }
 0x2a1   :  { %151 = shalt.err (!%p148_p4)
}
 0x2a2   :  { %s152_s17 = scalar_lea.hbm %s218_s2, 128 }
 0x2a3   :  { %p153_p5 = scmp.ne.s32.totalorder %s218_s2, %s152_s17  ;;  %p156_p6 = scmp.lt.u32.totalorder %s152_s17, %s218_s2 }
 0x2a5   :  { %p158_p7 = pnand %p156_p6, %p153_p5 }
 0x2a7   :  { %161 = shalt.err (!%p158_p7)
}
 0x2a8   :  { %120 = dma.vmem_to_hbm [thread:$0]  %s118_s1, 128, %s218_s2, [#allocation7]  }
 0x2a9   :  { %162 = dma.done.wait [#allocation7], 128  }
 0x2aa   :  { %163 = vsyncadd [#allocation7], 4294967168 }
 0x2ab   :  { %124 = vsyncpa [#allocation7], 1 }

</bundles_post_ra>
